<compile_context>
chip_gen: v6e
topology: v6e:2x2x1
jax: 0.10.0
libtpu: 0.0.40
codegen_flags: <defaults>
</compile_context>

<pallas_src>
import jax
import jax.numpy as jnp
from jax.experimental import pallas as pl
from jax.experimental.pallas import tpu as pltpu

NEG_SLOPE = 0.01  # torch.nn.LeakyReLU default
LANE = 128        # TPU lane width


def _leaky_relu(x):
    # max(x, a*x) == LeakyReLU(x) for 0 < a < 1
    return jnp.maximum(x, NEG_SLOPE * x)


def _round_up(n, m):
    return ((n + m - 1) // m) * m


def remover_kernel(x_ref, w1_ref, b1_ref, w2_ref, b2_ref, w3_ref, b3_ref, o_ref):
    cd = w1_ref.dtype                       # matmul operand dtype (bf16 by default)
    x = x_ref[...].astype(cd)               # cast in VMEM; HBM stream stays in x's dtype
    # Layer 1: (TB, D) @ (D, 128), f32 accumulate, f32 bias + LeakyReLU
    h1 = jnp.dot(x, w1_ref[...], preferred_element_type=jnp.float32)
    h1 = _leaky_relu(h1 + b1_ref[...])
    # Layer 2: (TB, 128) @ (128, 128pad)
    h2 = jnp.dot(h1.astype(cd), w2_ref[...], preferred_element_type=jnp.float32)
    h2 = _leaky_relu(h2 + b2_ref[...])
    # Layer 3: (TB, 128pad) @ (128pad, Cpad) — lane-dense matmul, narrow (C-wide) store
    out = jnp.dot(h2.astype(cd), w3_ref[...], preferred_element_type=jnp.float32)
    out = out + b3_ref[...]
    o_ref[...] = out[:, : o_ref.shape[-1]].astype(o_ref.dtype)


def _vmem_budget_bytes():
    """Generation-aware VMEM budget (per TensorCore)."""
    try:
        cap = int(pltpu.get_tpu_info().vmem_capacity_bytes)
    except Exception:
        cap = 64 << 20
    # v7x has 64 MiB/TC -> stay well under it; v5e/v6e have 128 MiB physical.
    return (40 << 20) if cap <= (64 << 20) else (96 << 20)


def _choose_batch_tile(B, tile_b, cap):
    sub = 8  # x / out blocks are 32-bit in HBM -> sublane multiple of 8
    if B <= sub:
        return B  # full-dim block (always legal)
    tb = min(tile_b, cap, B)
    tb = max(sub, (tb // sub) * sub)
    # v7x megacore: prefer >= 2 grid steps so both TensorCores get work.
    if pl.cdiv(B, tb) < 2 and B >= 2 * sub:
        tb = max(sub, _round_up(pl.cdiv(B, 2), sub))
    return tb


def remover_forward(x, params, *, tile_b=2048, compute_dtype=jnp.bfloat16):
    """Run the Remover MLP. x: (B, input_dim). params: dict of weights (torch-equivalent)."""
    w1, b1, w2, b2, w3, b3 = (
        params["w1"], params["b1"], params["w2"],
        params["b2"], params["w3"], params["b3"],
    )
    B, D = x.shape
    H1, H2, C = w1.shape[1], w2.shape[1], w3.shape[1]
    out_dtype = x.dtype

    # ---- pad narrow weight dims to the 128-lane width (exact for this net: padded bias
    #      = 0, LeakyReLU(0) = 0, padded weight rows contribute nothing).
    H1p = _round_up(H1, LANE)
    H2p = _round_up(H2, LANE)
    Cp = _round_up(C, LANE)

    def pad2(a, rows, cols):
        return jnp.pad(a, ((0, rows - a.shape[0]), (0, cols - a.shape[1])))

    w1p = pad2(w1, D, H1p).astype(compute_dtype)
    b1p = pad2(b1, 1, H1p).astype(jnp.float32)
    w2p = pad2(w2, H1p, H2p).astype(compute_dtype)
    b2p = pad2(b2, 1, H2p).astype(jnp.float32)
    w3p = pad2(w3, H2p, Cp).astype(compute_dtype)
    b3p = pad2(b3, 1, Cp).astype(jnp.float32)

    # ---- batch tile, capped by a generation-aware VMEM budget.
    in_bytes = jnp.dtype(compute_dtype).itemsize
    x_bytes = jnp.dtype(x.dtype).itemsize
    out_bytes = jnp.dtype(out_dtype).itemsize
    weight_bytes = ((D * H1p + H1p * H2p + H2p * Cp) * in_bytes
                    + (H1p + H2p + Cp) * 4)
    per_row_bytes = (2 * D * x_bytes          # double-buffered x tile
                     + 2 * C * out_bytes      # double-buffered output tile
                     + 4 * (H1p + H2p))       # f32 intermediates h1 / h2
    budget = _vmem_budget_bytes()
    cap = max(8, int((budget - 2 * weight_bytes) // per_row_bytes) // 8 * 8)

    tb = _choose_batch_tile(B, tile_b, cap)
    grid = (pl.cdiv(B, tb),)                  # partial last block handled by Pallas

    full = lambda shape: pl.BlockSpec(shape, lambda i: (0, 0))

    flops = 2 * B * (D * H1p + H1p * H2p + H2p * Cp)
    bytes_accessed = B * D * x_bytes + B * C * out_bytes + weight_bytes

    out = pl.pallas_call(
        remover_kernel,
        out_shape=jax.ShapeDtypeStruct((B, C), out_dtype),
        grid_spec=pltpu.PrefetchScalarGridSpec(
            num_scalar_prefetch=0,
            grid=grid,
            in_specs=[
                pl.BlockSpec((tb, D), lambda i: (i, 0)),  # x tile over the batch
                full((D, H1p)), full((1, H1p)),
                full((H1p, H2p)), full((1, H2p)),
                full((H2p, Cp)), full((1, Cp)),
            ],
            out_specs=pl.BlockSpec((tb, C), lambda i: (i, 0)),  # C-wide store, no padding
        ),
        compiler_params=pltpu.CompilerParams(
            dimension_semantics=("parallel",),     # megacore-shardable batch axis
            vmem_limit_bytes=int(budget),
        ),
        cost_estimate=pl.CostEstimate(
            flops=flops, transcendentals=0, bytes_accessed=bytes_accessed),
    )(x, w1p, b1p, w2p, b2p, w3p, b3p)

    return out


def init_params(key, input_dim, n_classes):
    """Deterministic synthetic init (uniform, Kaiming-like scale as torch Linear)."""
    ks = jax.random.split(key, 6)

    def lin(kw, kb, fan_in, fan_out):
        bound = 1.0 / jnp.sqrt(fan_in)
        w = jax.random.uniform(kw, (fan_in, fan_out), jnp.float32, -bound, bound)
        b = jax.random.uniform(kb, (1, fan_out), jnp.float32, -bound, bound)
        return w, b

    w1, b1 = lin(ks[0], ks[1], input_dim, 128)
    w2, b2 = lin(ks[2], ks[3], 128, 64)
    w3, b3 = lin(ks[4], ks[5], 64, n_classes)
    return {"w1": w1, "b1": b1, "w2": w2, "b2": b2, "w3": w3, "b3": b3}


def reference_forward(x, p):
    def lrelu(v):
        return jnp.where(v > 0, v, NEG_SLOPE * v)
    h = lrelu(x @ p["w1"] + p["b1"])
    h = lrelu(h @ p["w2"] + p["b2"])
    return h @ p["w3"] + p["b3"]


if __name__ == "__main__":
    key = jax.random.PRNGKey(0)
    k_param, k_x = jax.random.split(key)

    batch = 8
    input_dim = 32
    n_classes = 4

    params = init_params(k_param, input_dim, n_classes)
    x = jax.random.normal(k_x, (batch, input_dim), jnp.float32)
    ref = reference_forward(x, params)

    # Default (bf16 matmul operands, f32 accumulate): tolerate bf16 quantization.
    out = jax.block_until_ready(remover_forward(x, params))
    assert out.shape == (batch, n_classes)
    assert jnp.allclose(out, ref, atol=5e-2, rtol=5e-2)

    # Full-f32 path: exact-semantics check against the reference.
    out_f32 = jax.block_until_ready(remover_forward(x, params, compute_dtype=jnp.float32))
    assert jnp.allclose(out_f32, ref, atol=1e-5, rtol=1e-5)

    # Ragged batch + multi-step grid (exercises the partial last block, no jnp.pad of x).
    xr = jax.random.normal(jax.random.PRNGKey(1), (36, input_dim), jnp.float32)
    out_r = jax.block_until_ready(
        remover_forward(xr, params, tile_b=16, compute_dtype=jnp.float32))
    assert out_r.shape == (36, n_classes)
    assert jnp.allclose(out_r, reference_forward(xr, params), atol=1e-5, rtol=1e-5)

    print("KERNEL_OK")
</pallas_src>

<mosaic_0001>
module attributes {stable_mosaic.version = 11 : i64} {
  func.func @remover_kernel(%arg0: i32, %arg1: memref<8x32xf32, #tpu.memory_space<vmem>>, %arg2: memref<32x128xbf16, #tpu.memory_space<vmem>>, %arg3: memref<1x128xf32, #tpu.memory_space<vmem>>, %arg4: memref<128x128xbf16, #tpu.memory_space<vmem>>, %arg5: memref<1x128xf32, #tpu.memory_space<vmem>>, %arg6: memref<128x128xbf16, #tpu.memory_space<vmem>>, %arg7: memref<1x128xf32, #tpu.memory_space<vmem>>, %arg8: memref<8x4xf32, #tpu.memory_space<vmem>>) attributes {dimension_semantics = [#tpu.dimension_semantics<parallel>], iteration_bounds = array<i64: 1>, scalar_prefetch = 0 : i64, scratch_operands = 0 : i64, tpu.core_type = #tpu.core_type<tc>, window_params = [{transform_indices = @transform_0, window_bounds = array<i64: 8, 32>}, {pipeline_mode = #tpu.pipeline_mode<synchronous>, transform_indices = @transform_1, window_bounds = array<i64: 32, 128>}, {pipeline_mode = #tpu.pipeline_mode<synchronous>, transform_indices = @transform_2, window_bounds = array<i64: 1, 128>}, {pipeline_mode = #tpu.pipeline_mode<synchronous>, transform_indices = @transform_3, window_bounds = array<i64: 128, 128>}, {pipeline_mode = #tpu.pipeline_mode<synchronous>, transform_indices = @transform_4, window_bounds = array<i64: 1, 128>}, {pipeline_mode = #tpu.pipeline_mode<synchronous>, transform_indices = @transform_5, window_bounds = array<i64: 128, 128>}, {pipeline_mode = #tpu.pipeline_mode<synchronous>, transform_indices = @transform_6, window_bounds = array<i64: 1, 128>}, {transform_indices = @transform_7, window_bounds = array<i64: 8, 4>}]} {
    %c0 = arith.constant 0 : index
    %c0_0 = arith.constant 0 : index
    %0 = vector.load %arg1[%c0, %c0_0] : memref<8x32xf32, #tpu.memory_space<vmem>>, vector<8x32xf32>
    %1 = arith.truncf %0 : vector<8x32xf32> to vector<8x32xbf16>
    %c0_1 = arith.constant 0 : index
    %c0_2 = arith.constant 0 : index
    %2 = vector.load %arg2[%c0_1, %c0_2] : memref<32x128xbf16, #tpu.memory_space<vmem>>, vector<32x128xbf16>
    %cst = arith.constant dense<0.000000e+00> : vector<8x128xf32>
    %3 = tpu.matmul %1, %2, %cst {dimension_numbers = #tpu.dot_dimension_numbers<[1], [0], [0], [1], [0, 0, 1, 1], [], []>} : vector<8x32xbf16>, vector<32x128xbf16>, vector<8x128xf32> -> vector<8x128xf32>
    %c0_3 = arith.constant 0 : index
    %c0_4 = arith.constant 0 : index
    %4 = vector.load %arg3[%c0_3, %c0_4] : memref<1x128xf32, #tpu.memory_space<vmem>>, vector<1x128xf32>
    %5 = vector.broadcast %4 : vector<1x128xf32> to vector<8x128xf32>
    %6 = arith.addf %3, %5 : vector<8x128xf32>
    %cst_5 = arith.constant 0.00999999977 : f32
    %7 = vector.broadcast %cst_5 : f32 to vector<8x128xf32>
    %8 = arith.mulf %7, %6 : vector<8x128xf32>
    %9 = arith.maximumf %6, %8 : vector<8x128xf32>
    %10 = arith.truncf %9 : vector<8x128xf32> to vector<8x128xbf16>
    %c0_6 = arith.constant 0 : index
    %c0_7 = arith.constant 0 : index
    %11 = vector.load %arg4[%c0_6, %c0_7] : memref<128x128xbf16, #tpu.memory_space<vmem>>, vector<128x128xbf16>
    %cst_8 = arith.constant dense<0.000000e+00> : vector<8x128xf32>
    %12 = tpu.matmul %10, %11, %cst_8 {dimension_numbers = #tpu.dot_dimension_numbers<[1], [0], [0], [1], [0, 0, 1, 1], [], []>} : vector<8x128xbf16>, vector<128x128xbf16>, vector<8x128xf32> -> vector<8x128xf32>
    %c0_9 = arith.constant 0 : index
    %c0_10 = arith.constant 0 : index
    %13 = vector.load %arg5[%c0_9, %c0_10] : memref<1x128xf32, #tpu.memory_space<vmem>>, vector<1x128xf32>
    %14 = vector.broadcast %13 : vector<1x128xf32> to vector<8x128xf32>
    %15 = arith.addf %12, %14 : vector<8x128xf32>
    %cst_11 = arith.constant 0.00999999977 : f32
    %16 = vector.broadcast %cst_11 : f32 to vector<8x128xf32>
    %17 = arith.mulf %16, %15 : vector<8x128xf32>
    %18 = arith.maximumf %15, %17 : vector<8x128xf32>
    %19 = arith.truncf %18 : vector<8x128xf32> to vector<8x128xbf16>
    %c0_12 = arith.constant 0 : index
    %c0_13 = arith.constant 0 : index
    %20 = vector.load %arg6[%c0_12, %c0_13] : memref<128x128xbf16, #tpu.memory_space<vmem>>, vector<128x128xbf16>
    %cst_14 = arith.constant dense<0.000000e+00> : vector<8x128xf32>
    %21 = tpu.matmul %19, %20, %cst_14 {dimension_numbers = #tpu.dot_dimension_numbers<[1], [0], [0], [1], [0, 0, 1, 1], [], []>} : vector<8x128xbf16>, vector<128x128xbf16>, vector<8x128xf32> -> vector<8x128xf32>
    %c0_15 = arith.constant 0 : index
    %c0_16 = arith.constant 0 : index
    %22 = vector.load %arg7[%c0_15, %c0_16] : memref<1x128xf32, #tpu.memory_space<vmem>>, vector<1x128xf32>
    %23 = vector.broadcast %22 : vector<1x128xf32> to vector<8x128xf32>
    %24 = arith.addf %21, %23 : vector<8x128xf32>
    %25 = vector.extract_strided_slice %24 {offsets = [0, 0], sizes = [8, 4], strides = [1, 1]} : vector<8x128xf32> to vector<8x4xf32>
    %c0_17 = arith.constant 0 : index
    %c0_18 = arith.constant 0 : index
    %26 = vector.load %arg8[%c0_17, %c0_18] : memref<8x4xf32, #tpu.memory_space<vmem>>, vector<8x4xf32>
    tpu.vector_store %arg8[%c0_17, %c0_18], %25 {strides = array<i32>} : memref<8x4xf32, #tpu.memory_space<vmem>>, vector<8x4xf32>,
    return
  }
  func.func @transform_0(%arg0: i32) -> (i32, i32) {
    %c0_i32 = arith.constant 0 : i32
    %c0_i32_0 = arith.constant 0 : i32
    return %arg0, %c0_i32 : i32, i32
  }
  func.func @transform_1(%arg0: i32) -> (i32, i32) {
    %c0_i32 = arith.constant 0 : i32
    %c0_i32_0 = arith.constant 0 : i32
    %c0_i32_1 = arith.constant 0 : i32
    return %c0_i32, %c0_i32_0 : i32, i32
  }
  func.func @transform_2(%arg0: i32) -> (i32, i32) {
    %c0_i32 = arith.constant 0 : i32
    %c0_i32_0 = arith.constant 0 : i32
    %c0_i32_1 = arith.constant 0 : i32
    return %c0_i32, %c0_i32_0 : i32, i32
  }
  func.func @transform_3(%arg0: i32) -> (i32, i32) {
    %c0_i32 = arith.constant 0 : i32
    %c0_i32_0 = arith.constant 0 : i32
    %c0_i32_1 = arith.constant 0 : i32
    return %c0_i32, %c0_i32_0 : i32, i32
  }
  func.func @transform_4(%arg0: i32) -> (i32, i32) {
    %c0_i32 = arith.constant 0 : i32
    %c0_i32_0 = arith.constant 0 : i32
    %c0_i32_1 = arith.constant 0 : i32
    return %c0_i32, %c0_i32_0 : i32, i32
  }
  func.func @transform_5(%arg0: i32) -> (i32, i32) {
    %c0_i32 = arith.constant 0 : i32
    %c0_i32_0 = arith.constant 0 : i32
    %c0_i32_1 = arith.constant 0 : i32
    return %c0_i32, %c0_i32_0 : i32, i32
  }
  func.func @transform_6(%arg0: i32) -> (i32, i32) {
    %c0_i32 = arith.constant 0 : i32
    %c0_i32_0 = arith.constant 0 : i32
    %c0_i32_1 = arith.constant 0 : i32
    return %c0_i32, %c0_i32_0 : i32, i32
  }
  func.func @transform_7(%arg0: i32) -> (i32, i32) {
    %c0_i32 = arith.constant 0 : i32
    %c0_i32_0 = arith.constant 0 : i32
    return %arg0, %c0_i32 : i32, i32
  }
}

</mosaic_0001>

<bundles_post_ra>
// kernel: tpu_custom_call.1
= control target key start
LH: loop header
LB: loop body
LE: loop exit
PB: predicated region body
PF: predicated region fallthrough
CT: control target
= control target key end

     0   :  { %12 = vsyncpa [#allocation3], 0  ;;  %s694_s0 = inlined_call_operand.hbm [shape: f32[8,32], index: 0, kind: input, shape index: {}]   ;;  %s695_s1 = inlined_call_operand.hbm [shape: bf16[32,128], index: 1, kind: input, shape index: {}]   ;;  %s696_s2 = inlined_call_operand.vmem [shape: f32[1,128], index: 2, kind: input, shape index: {}]   ;;  %s697_s3 = inlined_call_operand.hbm [shape: bf16[128,128], index: 3, kind: input, shape index: {}]   ;;  %s698_s4 = inlined_call_operand.vmem [shape: f32[1,128], index: 4, kind: input, shape index: {}]   ;;  %s699_s5 = inlined_call_operand.hbm [shape: bf16[128,128], index: 5, kind: input, shape index: {}]   ;;  %s700_s6 = inlined_call_operand.vmem [shape: f32[1,128], index: 6, kind: input, shape index: {}]   ;;  %s701_s7 = inlined_call_operand.vmem [shape: f32[8,4], index: 7, kind: output, shape index: {}]  }
   0x1   :  { %13 = vsyncpa [#allocation5], 0 }
   0x2   :  { %14 = vsyncpa [#allocation8], 0  ;;  %s589_s24 = smov [#allocation4]  }
   0x3   :  { %s30_s25 = sshll.u32 %s589_s24, 4  ;;  %s31_s25 = int_to_ptr.vmem [resolvable:$true] %s30_s25 }
   0x4   :  { %s511_s26 = scalar_lea.vmem %s31_s25, 256  ;;  %p516_p1 = scmp.lt.s32.totalorder %s31_s25, %s31_s25 }
   0x5   :  { %p512_p0 = scmp.ne.s32.totalorder %s31_s25, %s511_s26  ;;  %p517_p2 = scmp.lt.s32.totalorder %s511_s26, %s511_s26 }
   0x7   :  { %p518_p3 = por %p517_p2, %p516_p1 }
   0x9   :  { %p519_p4 = pnand %p518_p3, %p512_p0 }
   0xb   :  { %522 = shalt.err (!%p519_p4)
}
   0xc   :  { %s590_s27 = smov 64   ;;  %s591_s28 = smov 4  }
   0xd   :  { %36 = dma.hbm_to_vmem [thread:$0]  %s695_s1, 256, %s31_s25, [#allocation5], %s590_s27, %s590_s27, %s591_s28  }
   0xe   :  { %s592_s8 = smov [#allocation2]   ;;  %s593_s10 = smov [#allocation6]  }
   0xf   :  { %s21_s9 = sshll.u32 %s592_s8, 4  ;;  %s44_s11 = sshll.u32 %s593_s10, 4  ;;  %s22_s9 = int_to_ptr.vmem [resolvable:$true] %s21_s9  ;;  %s45_s11 = int_to_ptr.vmem [resolvable:$true] %s44_s11 }
  0x10   :  { %s531_s12 = scalar_lea.vmem %s22_s9, 128  ;;  %p536_p6 = scmp.lt.s32.totalorder %s22_s9, %s22_s9 }
  0x11   :  { %p532_p5 = scmp.ne.s32.totalorder %s22_s9, %s531_s12  ;;  %p537_p7 = scmp.lt.s32.totalorder %s531_s12, %s531_s12 }
  0x13   :  { %p538_p8 = por %p537_p7, %p536_p6 }
  0x15   :  { %p539_p9 = pnand %p538_p8, %p532_p5 }
  0x17   :  { %542 = shalt.err (!%p539_p9)
}
  0x18   :  { %24 = dma.hbm_to_vmem [thread:$0]  %s694_s0, 128, %s22_s9, [#allocation3]  }
  0x19   :  { %s551_s15 = scalar_lea.vmem %s45_s11, 1024  ;;  %p556_p11 = scmp.lt.s32.totalorder %s45_s11, %s45_s11 }
  0x1a   :  { %p552_p10 = scmp.ne.s32.totalorder %s45_s11, %s551_s15  ;;  %p557_p12 = scmp.lt.s32.totalorder %s551_s15, %s551_s15 }
  0x1c   :  { %p558_p13 = por %p557_p12, %p556_p11 }
  0x1e   :  { %p559_p0 = pnand %p558_p13, %p552_p10 }
  0x20   :  { %562 = shalt.err (!%p559_p0)
}
  0x21   :  { %50 = dma.hbm_to_vmem [thread:$0]  %s697_s3, 1024, %s45_s11, [#allocation5], %s590_s27, %s590_s27, %s591_s28  }
  0x22   :  { %s594_s17 = smov [#allocation7]  }
  0x23   :  { %s58_s18 = sshll.u32 %s594_s17, 4  ;;  %s59_s18 = int_to_ptr.vmem [resolvable:$true] %s58_s18 }
  0x24   :  { %s571_s19 = scalar_lea.vmem %s59_s18, 1024  ;;  %p576_p2 = scmp.lt.s32.totalorder %s59_s18, %s59_s18 }
  0x25   :  { %p572_p1 = scmp.ne.s32.totalorder %s59_s18, %s571_s19  ;;  %p577_p3 = scmp.lt.s32.totalorder %s571_s19, %s571_s19 }
  0x27   :  { %p578_p4 = por %p577_p3, %p576_p2 }
  0x29   :  { %p579_p5 = pnand %p578_p4, %p572_p1 }
  0x2b   :  { %582 = shalt.err (!%p579_p5)
}
  0x2c   :  { %64 = dma.hbm_to_vmem [thread:$0]  %s699_s5, 1024, %s59_s18, [#allocation8], %s590_s27, %s590_s27, %s591_s28  }
  0x2d   :  { %583 = dma.done.wait [#allocation3], 128  }
  0x2e   :  { %584 = vsyncadd [#allocation3], 4294967168 }
  0x2f   :  { %585 = dma.done.wait [#allocation5], 1280  }
  0x30   :  { %586 = vsyncadd [#allocation5], 4294966016 }
  0x31   :  { %587 = dma.done.wait [#allocation8], 1024  }
  0x32   :  { %588 = vsyncadd [#allocation8], 4294966272  ;;  %v595_v0 = vmov 0.0   ;;  %vm596_vm0 = vmmov 0   ;;  %v485_v1 = vld [vmem:[#allocation4 + $0x8] sm:$0xff]   ;;  %v486_v2 = vld [vmem:[#allocation4] sm:$0xff]  }
  0x33   :  { %429 = vmatprep.subr.bf16.mxu0 %v595_v0  ;;  %433 = vmatprep.mubr.msk.bf16.mxu0 %vm596_vm0, %v595_v0  ;;  %v80_v3 = vld [vmem:[#allocation2] sm:$0xff]  ;;  %v487_v4 = vld [vmem:[#allocation6 + $0x38] sm:$0xff]   ;;  %v488_v6 = vld [vmem:[#allocation6 + $0x30] sm:$0xff]   ;;  %vm105_vm1 = vcmask 261120   ;;  %vm377_vm2 = vcmask 31744  }
  0x34   :  { %437 = vmatprep.subr.bf16.mxu1 %v595_v0  ;;  %453 = vmatprep.mubr.msk.bf16.mxu1 %vm596_vm0, %v595_v0  ;;  %v81_v5 = vpack.c.bf16 %v80_v3, %v80_v3  ;;  %v489_v7 = vld [vmem:[#allocation6 + $0x28] sm:$0xff]   ;;  %v490_v8 = vld [vmem:[#allocation6 + $0x20] sm:$0xff]   ;;  %v491_v9 = vld [vmem:[#allocation6 + $0x18] sm:$0xff]  }
  0x35   :  { %430 = vmatpush3.bf16.msra.mxu0 %v485_v1  ;;  %438 = vmatpush3.bf16.msra.mxu1 %v487_v4  ;;  %v492_v10 = vld [vmem:[#allocation6 + $0x10] sm:$0xff]   ;;  %v493_v11 = vld [vmem:[#allocation6 + $0x8] sm:$0xff]   ;;  %v494_v12 = vld [vmem:[#allocation6] sm:$0xff]  }
  0x36   :  { %431 = vmatprep.subr.bf16.mxu0 %v595_v0  ;;  %439 = vmatprep.subr.bf16.mxu1 %v595_v0  ;;  %v495_v13 = vld [vmem:[#allocation7 + $0x38] sm:$0xff]   ;;  %v496_v14 = vld [vmem:[#allocation7 + $0x30] sm:$0xff]   ;;  %v497_v15 = vld [vmem:[#allocation7 + $0x28] sm:$0xff]  }
  0x37   :  { %v498_v16 = vld [vmem:[#allocation7 + $0x20] sm:$0xff]   ;;  %v499_v17 = vld [vmem:[#allocation7 + $0x18] sm:$0xff]   ;;  %v500_v18 = vld [vmem:[#allocation7 + $0x10] sm:$0xff]  }
  0x38   :  { %v386_v19 = vld [vmem:[%s696_s2] ss:$0 sm:$0xff]  ;;  %v502_v29 = vld [vmem:[#allocation7] sm:$0xff]  }
  0x39   :  { %432 = vmatpush3.bf16.msra.mxu0 %v486_v2  ;;  %440 = vmatpush3.bf16.msra.mxu1 %v488_v6  ;;  %v501_v28 = vld [vmem:[#allocation7 + $0x8] sm:$0xff]  }
  0x3a   :  { %457 = vmatprep.subr.bf16.mxu0 %v595_v0  ;;  %441 = vmatprep.subr.bf16.mxu1 %v595_v0  ;;  %v390_v30 = vld [vmem:[%s698_s4] ss:$0 sm:$0xff] }
  0x3b   :  { %v399_v39 = vld [vmem:[%s700_s6] ss:$0 sm:$0xff] }
  0x3c   :  { %434 = vmatmul.mubr.msk.bf16.vlgmr.msra.gmra.mxu0 %vm105_vm1, %v81_v5 }
  0x3d   :  { %473 = vmatprep.mubr.msk.bf16.mxu0 %vm596_vm0, %v595_v0  ;;  %442 = vmatpush3.bf16.msra.mxu1 %v489_v7 }
  0x3e   :  { %443 = vmatprep.subr.bf16.mxu1 %v595_v0  ;;  %458 = vmatpush3.bf16.msra.mxu0 %v495_v13 }
  0x3f   :  { %459 = vmatprep.subr.bf16.mxu0 %v595_v0 }
  0x41   :  { %444 = vmatpush3.bf16.msra.mxu1 %v490_v8 }
  0x42   :  { %445 = vmatprep.subr.bf16.mxu1 %v595_v0  ;;  %460 = vmatpush3.bf16.msra.mxu0 %v496_v14 }
  0x43   :  { %461 = vmatprep.subr.bf16.mxu0 %v595_v0 }
  0x45   :  { %446 = vmatpush3.bf16.msra.mxu1 %v491_v9 }
  0x46   :  { %447 = vmatprep.subr.bf16.mxu1 %v595_v0  ;;  %462 = vmatpush3.bf16.msra.mxu0 %v497_v15 }
  0x47   :  { %463 = vmatprep.subr.bf16.mxu0 %v595_v0 }
  0x49   :  { %448 = vmatpush3.bf16.msra.mxu1 %v492_v10 }
  0x4a   :  { %449 = vmatprep.subr.bf16.mxu1 %v595_v0  ;;  %464 = vmatpush3.bf16.msra.mxu0 %v498_v16 }
  0x4b   :  { %465 = vmatprep.subr.bf16.mxu0 %v595_v0 }
  0x4d   :  { %450 = vmatpush3.bf16.msra.mxu1 %v493_v11 }
  0x4e   :  { %451 = vmatprep.subr.bf16.mxu1 %v595_v0  ;;  %466 = vmatpush3.bf16.msra.mxu0 %v499_v17 }
  0x4f   :  { %467 = vmatprep.subr.bf16.mxu0 %v595_v0 }
  0x51   :  { %452 = vmatpush3.bf16.msra.mxu1 %v494_v12 }
  0x52   :  { %468 = vmatpush3.bf16.msra.mxu0 %v500_v18 }
  0x53   :  { %469 = vmatprep.subr.bf16.mxu0 %v595_v0 }
  0x56   :  { %470 = vmatpush3.bf16.msra.mxu0 %v501_v28 }
  0x57   :  { %471 = vmatprep.subr.bf16.mxu0 %v595_v0 }
  0x5a   :  { %472 = vmatpush3.bf16.msra.mxu0 %v502_v29 }
  0xfc   :  { %v143_v20 = vpop.f32.mrf.mxu0 }
  0xfd   :  { %v144_v21 = vadd.f32 %v386_v19, %v143_v20 }
  0xfe   :  { %v435_v22 = vpop.f32.mrf.mxu0 }
  0xff   :  { %v149_v23 = vmul.f32 0.01, %v144_v21 }
 0x100   :  { %v146_v24 = vpop.f32.mrf.mxu0 }
 0x101   :  { %v150_v25 = vmax.f32 %v144_v21, %v149_v23 }
 0x102   :  { %v436_v26 = vpop.f32.mrf.mxu0 }
 0x103   :  { %v151_v27 = vpack.c.bf16 %v150_v25, %v150_v25 }
 0x105   :  { %454 = vmatmul.mubr.bf16.vlgmr.msra.gmra.mxu1 %v151_v27 }
 0x1c5   :  { %v257_v31 = vpop.f32.mrf.mxu1 }
 0x1c6   :  { %v258_v32 = vadd.f32 %v390_v30, %v257_v31 }
 0x1c7   :  { %v455_v33 = vpop.f32.mrf.mxu1 }
 0x1c8   :  { %v263_v34 = vmul.f32 0.01, %v258_v32 }
 0x1c9   :  { %v260_v35 = vpop.f32.mrf.mxu1 }
 0x1ca   :  { %v264_v36 = vmax.f32 %v258_v32, %v263_v34 }
 0x1cb   :  { %v456_v37 = vpop.f32.mrf.mxu1 }
 0x1cc   :  { %v265_v38 = vpack.c.bf16 %v264_v36, %v264_v36 }
 0x1ce   :  { %474 = vmatmul.mubr.bf16.vlgmr.msra.gmra.mxu0 %v265_v38 }
 0x28e   :  { %v371_v40 = vpop.f32.mrf.mxu0 }
 0x28f   :  { %v372_v41 = vadd.f32 %v399_v39, %v371_v40 }
 0x290   :  { %v475_v42 = vpop.f32.mrf.mxu0 }
 0x291   :  { %378 = vst.msk [vmem:[%s701_s7] sm:$0xff] %vm377_vm2, %v372_v41 }
 0x292   :  { %v374_v43 = vpop.f32.mrf.mxu0 }
 0x294   :  { %v476_v44 = vpop.f32.mrf.mxu0 }
 0x295   :  { %383 = vsyncpa [#allocation3], 1 }
 0x296   :  { %384 = vsyncpa [#allocation5], 1 }
 0x297   :  { %385 = vsyncpa [#allocation8], 1 }

</bundles_post_ra>
